<compile_context>
chip_gen: v5e
topology: v5e:2x2
jax: 0.10.0
libtpu: 0.0.40
codegen_flags: <defaults>
</compile_context>

<pallas_src>
import math

import jax
import jax.numpy as jnp
from jax.experimental import pallas as pl
from jax.experimental.pallas import tpu as pltpu

# ---------------- configuration --------------------------------------------------
TVCGMM_ENABLED = True
K = 3
MIN_VAR = 1e-3
PITCH_FEATURE_LEVEL = "phoneme_level"
ENERGY_FEATURE_LEVEL = "phoneme_level"

LOG_2PI = math.log(2.0 * math.pi)
LANE = 128
SUB = 8
TILE_R_MAX = 512  # rows of 128 lanes per grid step (all generations)


def _round_up(x, m):
    return ((x + m - 1) // m) * m


def _num_core_splits():
    """2 on multi-TensorCore chips (v7x / v5p / v4), else 1.

    Matches '7x' / 'tpu7' as well as 'v7' because the v7x device_kind string
    may not contain 'v7'.  On single-core chips a split of 1 is used; on
    multi-core chips the leading "parallel" grid axis lets Mosaic shard the
    two halves across the cores (each with its own partial output block).
    """
    try:
        kind = jax.devices()[0].device_kind.lower()
    except Exception:  # pragma: no cover - defensive
        return 1
    if any(tag in kind for tag in ("v7", "7x", "tpu7", "v5p", "v4")):
        return 2
    return 1


# ---------------- Pallas kernel (heavy TVC-GMM NLL reduction) ---------------------

def _make_nll_kernel(tile_r, r_valid):
    """Builds the per-tile TVC-GMM NLL partial-sum kernel.

    params_ref: bf16 [K*10, tile_r, 128]  GMM parameter planes (this row tile)
    tgt_ref:    f32  [4,    tile_r, 128]  (mel value, next frame, next bin, mask)
    acc_ref:    f32  [8, 128]             per-core resident vector accumulator
    """

    def kernel(params_ref, tgt_ref, acc_ref):
        r = pl.program_id(1)

        @pl.when(r == 0)
        def _init():
            acc_ref[...] = jnp.zeros_like(acc_ref)

        # Logical (unclamped) tile index -> global 128-lane row ids.  Rows at
        # or beyond r_valid (ragged last tile, or overhang steps of the core
        # split whose index_map was clamped) contain stale VMEM; they are
        # excluded here, and jnp.where keeps any NaN/Inf they might produce
        # out of the accumulator.
        tile_idx = pl.program_id(0) * pl.num_programs(1) + r
        row_ids = tile_idx * tile_r + jax.lax.broadcasted_iota(
            jnp.int32, (tile_r, LANE), 0)
        in_range = row_ids < r_valid

        t0 = tgt_ref[0]
        t1 = tgt_ref[1]
        t2 = tgt_ref[2]
        mask = (tgt_ref[3] > 0.0) & in_range

        logits = []
        totals = []  # mixture logit_k + component log-prob_k
        for ki in range(K):
            base = ki * 10
            w = params_ref[base + 0].astype(jnp.float32)
            mu0 = params_ref[base + 1].astype(jnp.float32)
            mu1 = params_ref[base + 2].astype(jnp.float32)
            mu2 = params_ref[base + 3].astype(jnp.float32)
            # stabilized softplus + min_var, as in the reference
            s0 = jax.nn.softplus(params_ref[base + 4].astype(jnp.float32)) + MIN_VAR
            s1 = jax.nn.softplus(params_ref[base + 5].astype(jnp.float32)) + MIN_VAR
            s2 = jax.nn.softplus(params_ref[base + 6].astype(jnp.float32)) + MIN_VAR
            l10 = params_ref[base + 7].astype(jnp.float32)  # L[1,0]
            l21 = params_ref[base + 8].astype(jnp.float32)  # L[2,1]
            l20 = params_ref[base + 9].astype(jnp.float32)  # L[2,0]

            # One EUP reciprocal of the scale product + one Newton step (VPU);
            # the same product feeds the exact log-det term.
            prod = s0 * s1 * s2
            inv = pl.reciprocal(prod, approx=True)
            inv = inv * (2.0 - prod * inv)  # Newton refinement (cheap, VPU)
            inv_s0 = (s1 * s2) * inv
            inv_s1 = (s0 * s2) * inv
            inv_s2 = (s0 * s1) * inv

            # Solve L z = (x - mu) for lower-triangular 3x3 L (Mahalanobis term)
            z0 = (t0 - mu0) * inv_s0
            z1 = (t1 - mu1 - l10 * z0) * inv_s1
            z2 = (t2 - mu2 - l20 * z0 - l21 * z1) * inv_s2

            comp_lp = (-0.5 * (z0 * z0 + z1 * z1 + z2 * z2)
                       - jnp.log(prod) - 1.5 * LOG_2PI)
            logits.append(w)
            totals.append(w + comp_lp)

        # log_softmax folded into the mixture logsumexp:
        #   mix_lp = lse_k(w_k + comp_lp_k) - lse_k(w_k)
        mx = logits[0]
        for ki in range(1, K):
            mx = jnp.maximum(mx, logits[ki])
        se = jnp.exp(logits[0] - mx)
        for ki in range(1, K):
            se = se + jnp.exp(logits[ki] - mx)
        lse = mx + jnp.log(se)

        mt = totals[0]
        for ki in range(1, K):
            mt = jnp.maximum(mt, totals[ki])
        st = jnp.exp(totals[0] - mt)
        for ki in range(1, K):
            st = st + jnp.exp(totals[ki] - mt)
        mix_lp = mt + jnp.log(st) - lse

        # jnp.where (not mask-multiply): NaN-safe against stale ragged rows.
        masked = jnp.where(mask, mix_lp, 0.0)

        # Fold (tile_r,128) -> (8,128) with pure VPU adds (no cross-lane XLU
        # reduce, no SMEM scalar RMW); the final reduce happens in the wrapper.
        partial = masked[0:SUB]
        for i in range(1, tile_r // SUB):
            partial = partial + masked[i * SUB:(i + 1) * SUB]
        acc_ref[...] += partial

    return kernel


# ---------------- wrapper --------------------------------------------------------

def fastspeech2_loss(inputs, predictions):
    """Mirrors FastSpeech2Loss.forward for the configuration above."""
    mel_targets, _, _, pitch_targets, energy_targets, duration_targets = inputs[6:]
    (value_predictions, pitch_predictions, energy_predictions,
     log_duration_predictions, _, src_masks, mel_masks, _, _) = predictions

    src_valid = jnp.logical_not(src_masks)  # ~src_masks
    mel_valid = jnp.logical_not(mel_masks)  # ~mel_masks

    B, T, M = mel_targets.shape
    N = B * T * M
    r_valid = pl.cdiv(N, LANE)  # exact number of 128-lane rows

    # Tile size: 512 on all generations (bf16 blocks -> ~10 MB double-buffered,
    # under every chip's scoped VMEM default).  For tiny inputs the tile shrinks
    # to a 16-row multiple (bf16 sublane packing) and the arrays are padded to
    # at least one full tile; for large inputs only the last 128-lane row is
    # column-padded and the last tile is ragged (gated in-kernel).
    if r_valid >= TILE_R_MAX:
        tile_r = TILE_R_MAX
        r_rows = r_valid
    else:
        tile_r = _round_up(r_valid, 16)
        r_rows = tile_r
    n_cols = r_rows * LANE

    total_tiles = pl.cdiv(r_valid, tile_r)
    n_split = _num_core_splits() if total_tiles >= 2 else 1
    tiles_per_core = pl.cdiv(total_tiles, n_split)

    # --- GMM parameter planes: one fused transpose + bf16-convert relayout ----
    # The reference slice [:, :mel_masks.shape[1]] is a no-op here (T == mask T).
    # TODO(synk): emit value_predictions [K,10]-plane-major upstream so this
    # single remaining HBM relayout pass disappears.
    params = value_predictions.reshape(B, T, M, K, 10)
    params = jnp.transpose(params, (3, 4, 0, 1, 2)).reshape(K * 10, N)
    params = params.astype(jnp.bfloat16)
    if n_cols != N:
        params = jnp.pad(params, ((0, 0), (0, n_cols - N)))
    params = params.reshape(K * 10, r_rows, LANE)

    # --- trivariate targets (value, next frame, next mel bin) + mask plane ----
    # TODO(synk): derive t1/t2 in-kernel from t0 with a 1-row halo BlockSpec to
    # cut this stream from 16 B/elem to ~8 B/elem.
    t0 = mel_targets.astype(jnp.float32)
    t1 = jnp.concatenate([t0[:, 1:, :], jnp.zeros((B, 1, M), jnp.float32)], axis=1)
    t2 = jnp.concatenate([t0[:, :, 1:], jnp.zeros((B, T, 1), jnp.float32)], axis=2)
    mmask = jnp.broadcast_to(mel_valid[:, :, None], (B, T, M)).astype(jnp.float32)
    tgt = jnp.stack([t0, t1, t2, mmask], axis=0).reshape(4, N)
    if n_cols != N:
        tgt = jnp.pad(tgt, ((0, 0), (0, n_cols - N)))
    tgt = tgt.reshape(4, r_rows, LANE)

    def blk_map(c, r):
        # Clamp so overhang steps of the core split never DMA out of bounds;
        # their contribution is zeroed in-kernel via the global-row mask.
        t = jnp.minimum(c * tiles_per_core + r, total_tiles - 1)
        return (0, t, 0)

    partials = pl.pallas_call(
        _make_nll_kernel(tile_r, r_valid),
        out_shape=jax.ShapeDtypeStruct((n_split * SUB, LANE), jnp.float32),
        grid_spec=pltpu.PrefetchScalarGridSpec(
            num_scalar_prefetch=0,
            grid=(n_split, tiles_per_core),
            in_specs=[
                pl.BlockSpec((K * 10, tile_r, LANE), blk_map),
                pl.BlockSpec((4, tile_r, LANE), blk_map),
            ],
            out_specs=pl.BlockSpec((SUB, LANE), lambda c, r: (c, 0)),
        ),
        compiler_params=pltpu.CompilerParams(
            dimension_semantics=("parallel", "arbitrary")),
    )(params, tgt)

    # --- tiny epilogue (wrapper): final divides + phoneme-level losses --------
    # O(B*T_src) elements; reviewer-endorsed to keep these out of the parallel
    # reduction kernel.  Division by the true count (NaN if all masked) matches
    # the PyTorch reference semantics.
    mel_count = jnp.sum(mel_valid.astype(jnp.float32)) * M
    value_loss = -(jnp.sum(partials) / mel_count)

    sm = src_valid
    scnt = jnp.sum(sm.astype(jnp.float32))

    # SmoothL1 (beta = 1.0, PyTorch default) on pitch
    dp = pitch_predictions - pitch_targets
    sl1 = jnp.where(jnp.abs(dp) < 1.0, 0.5 * dp * dp, jnp.abs(dp) - 0.5)
    pitch_loss = jnp.sum(jnp.where(sm, sl1, 0.0)) / scnt

    # MSE on energy
    de = energy_predictions - energy_targets
    energy_loss = jnp.sum(jnp.where(sm, de * de, 0.0)) / scnt

    # MSE on log(duration + 1)
    dd = log_duration_predictions - jnp.log(duration_targets.astype(jnp.float32) + 1.0)
    duration_loss = jnp.sum(jnp.where(sm, dd * dd, 0.0)) / scnt

    total_loss = value_loss + duration_loss + pitch_loss + energy_loss
    return total_loss, value_loss, pitch_loss, energy_loss, duration_loss


# ---------------- pure-JAX reference (for correctness check) ---------------------

def _reference_loss(inputs, predictions):
    mel_targets, _, _, pitch_targets, energy_targets, duration_targets = inputs[6:]
    (value_predictions, pitch_predictions, energy_predictions,
     log_duration_predictions, _, src_masks, mel_masks, _, _) = predictions
    src_valid = jnp.logical_not(src_masks)
    mel_valid = jnp.logical_not(mel_masks)
    B, T, M = mel_targets.shape

    p = value_predictions.reshape(B, T, M, K, 10)
    logw = jax.nn.log_softmax(p[..., 0], axis=-1)
    mu = p[..., 1:4]
    s = jax.nn.softplus(p[..., 4:7]) + MIN_VAR
    l10, l21, l20 = p[..., 7], p[..., 8], p[..., 9]

    t0 = mel_targets
    t1 = jnp.concatenate([mel_targets[:, 1:, :], jnp.zeros((B, 1, M))], axis=1)
    t2 = jnp.concatenate([mel_targets[:, :, 1:], jnp.zeros((B, T, 1))], axis=2)
    x = jnp.stack([t0, t1, t2], axis=-1)[..., None, :]  # [B,T,M,1,3]

    z0 = (x[..., 0] - mu[..., 0]) / s[..., 0]
    z1 = (x[..., 1] - mu[..., 1] - l10 * z0) / s[..., 1]
    z2 = (x[..., 2] - mu[..., 2] - l20 * z0 - l21 * z1) / s[..., 2]
    comp_lp = (-0.5 * (z0 ** 2 + z1 ** 2 + z2 ** 2)
               - jnp.sum(jnp.log(s), axis=-1) - 1.5 * LOG_2PI)
    mix_lp = jax.nn.logsumexp(logw + comp_lp, axis=-1)  # [B,T,M]

    mmask = jnp.broadcast_to(mel_valid[:, :, None], (B, T, M))
    value_loss = -(jnp.sum(jnp.where(mmask, mix_lp, 0.0)) / jnp.sum(mmask))

    sm = src_valid
    cnt = jnp.sum(sm)
    dp = pitch_predictions - pitch_targets
    sl1 = jnp.where(jnp.abs(dp) < 1.0, 0.5 * dp * dp, jnp.abs(dp) - 0.5)
    pitch_loss = jnp.sum(jnp.where(sm, sl1, 0.0)) / cnt
    de = energy_predictions - energy_targets
    energy_loss = jnp.sum(jnp.where(sm, de * de, 0.0)) / cnt
    dd = log_duration_predictions - jnp.log(duration_targets.astype(jnp.float32) + 1.0)
    duration_loss = jnp.sum(jnp.where(sm, dd * dd, 0.0)) / cnt

    total = value_loss + duration_loss + pitch_loss + energy_loss
    return total, value_loss, pitch_loss, energy_loss, duration_loss


# ---------------- main ------------------------------------------------------------

if __name__ == "__main__":
    key = jax.random.PRNGKey(0)
    B, T_mel, N_MEL, T_src = 2, 16, 8, 8

    ks = jax.random.split(key, 8)
    mel_targets = jax.random.normal(ks[0], (B, T_mel, N_MEL), jnp.float32)
    value_predictions = 0.5 * jax.random.normal(
        ks[1], (B, T_mel, N_MEL * K * 10), jnp.float32)
    pitch_targets = jax.random.normal(ks[2], (B, T_src), jnp.float32)
    pitch_predictions = jax.random.normal(ks[3], (B, T_src), jnp.float32)
    energy_targets = jax.random.normal(ks[4], (B, T_src), jnp.float32)
    energy_predictions = jax.random.normal(ks[5], (B, T_src), jnp.float32)
    duration_targets = jax.random.randint(ks[6], (B, T_src), 0, 10, jnp.int32)
    log_duration_predictions = jax.random.normal(ks[7], (B, T_src), jnp.float32)

    src_lens = jnp.array([8, 6], jnp.int32)
    mel_lens = jnp.array([16, 12], jnp.int32)
    # padding masks (True = padded position), matching the model convention
    src_masks = jnp.arange(T_src)[None, :] >= src_lens[:, None]
    mel_masks = jnp.arange(T_mel)[None, :] >= mel_lens[:, None]

    inputs = (None,) * 6 + (mel_targets, None, None, pitch_targets,
                            energy_targets, duration_targets)
    predictions = (value_predictions, pitch_predictions, energy_predictions,
                   log_duration_predictions, None, src_masks, mel_masks,
                   None, None)

    losses = fastspeech2_loss(inputs, predictions)
    losses = jax.block_until_ready(losses)

    ref = _reference_loss(inputs, predictions)
    # Tolerance accounts for the (reviewer-endorsed) bf16 carriage of the GMM
    # parameter planes through HBM; the reciprocal is Newton-refined so its
    # approximation error is negligible.
    for a, b in zip(losses, ref):
        assert jnp.allclose(a, b, rtol=2e-2, atol=2e-2), (a, b)

    print("KERNEL_OK")
</pallas_src>

<mosaic_0001>
module attributes {stable_mosaic.version = 11 : i64} {
  func.func @kernel(%arg0: i32, %arg1: i32, %arg2: memref<30x16x128xbf16, #tpu.memory_space<vmem>>, %arg3: memref<4x16x128xf32, #tpu.memory_space<vmem>>, %arg4: memref<8x128xf32, #tpu.memory_space<vmem>>) attributes {dimension_semantics = [#tpu.dimension_semantics<parallel>, #tpu.dimension_semantics<arbitrary>], iteration_bounds = array<i64: 1, 1>, scalar_prefetch = 0 : i64, scratch_operands = 0 : i64, tpu.core_type = #tpu.core_type<tc>, window_params = [{transform_indices = @transform_0, window_bounds = array<i64: 30, 16, 128>}, {transform_indices = @transform_1, window_bounds = array<i64: 4, 16, 128>}, {transform_indices = @transform_2, window_bounds = array<i64: 8, 128>}]} {
    %c0_i32 = arith.constant 0 : i32
    %0 = arith.cmpi eq, %arg1, %c0_i32 : i32
    %1 = arith.extui %0 : i1 to i32
    %c0_i32_0 = arith.constant 0 : i32
    %2 = arith.cmpi ne, %1, %c0_i32_0 : i32
    scf.if %2 {
      %cst_114 = arith.constant 0.000000e+00 : f32
      %400 = vector.broadcast %cst_114 : f32 to vector<8x128xf32>
      %c0_115 = arith.constant 0 : index
      %c0_116 = arith.constant 0 : index
      %401 = vector.load %arg4[%c0_115, %c0_116] : memref<8x128xf32, #tpu.memory_space<vmem>>, vector<8x128xf32>
      tpu.vector_store %arg4[%c0_115, %c0_116], %400 {strides = array<i32>} : memref<8x128xf32, #tpu.memory_space<vmem>>, vector<8x128xf32>,
    } else {
    }
    %c1_i32 = arith.constant 1 : i32
    %3 = arith.muli %arg0, %c1_i32 : i32
    %4 = arith.addi %3, %arg1 : i32
    %c16_i32 = arith.constant 16 : i32
    %5 = arith.muli %4, %c16_i32 : i32
    %6 = tpu.iota {dimensions = array<i32: 0>} : vector<16x128xi32>
    %7 = vector.broadcast %5 : i32 to vector<16x128xi32>
    %8 = arith.addi %7, %6 : vector<16x128xi32>
    %c2_i32 = arith.constant 2 : i32
    %9 = vector.broadcast %c2_i32 : i32 to vector<16x128xi32>
    %10 = arith.cmpi slt, %8, %9 : vector<16x128xi32>
    %c0 = arith.constant 0 : index
    %c0_1 = arith.constant 0 : index
    %c0_2 = arith.constant 0 : index
    %11 = vector.load %arg3[%c0, %c0_1, %c0_2] : memref<4x16x128xf32, #tpu.memory_space<vmem>>, vector<1x16x128xf32>
    %12 = vector.shape_cast %11 : vector<1x16x128xf32> to vector<16x128xf32>
    %c1 = arith.constant 1 : index
    %c0_3 = arith.constant 0 : index
    %c0_4 = arith.constant 0 : index
    %13 = vector.load %arg3[%c1, %c0_3, %c0_4] : memref<4x16x128xf32, #tpu.memory_space<vmem>>, vector<1x16x128xf32>
    %14 = vector.shape_cast %13 : vector<1x16x128xf32> to vector<16x128xf32>
    %c2 = arith.constant 2 : index
    %c0_5 = arith.constant 0 : index
    %c0_6 = arith.constant 0 : index
    %15 = vector.load %arg3[%c2, %c0_5, %c0_6] : memref<4x16x128xf32, #tpu.memory_space<vmem>>, vector<1x16x128xf32>
    %16 = vector.shape_cast %15 : vector<1x16x128xf32> to vector<16x128xf32>
    %c3 = arith.constant 3 : index
    %c0_7 = arith.constant 0 : index
    %c0_8 = arith.constant 0 : index
    %17 = vector.load %arg3[%c3, %c0_7, %c0_8] : memref<4x16x128xf32, #tpu.memory_space<vmem>>, vector<1x16x128xf32>
    %18 = vector.shape_cast %17 : vector<1x16x128xf32> to vector<16x128xf32>
    %cst = arith.constant 0.000000e+00 : f32
    %19 = vector.broadcast %cst : f32 to vector<16x128xf32>
    %20 = arith.cmpf ogt, %18, %19 : vector<16x128xf32>
    %21 = arith.andi %20, %10 : vector<16x128xi1>
    %c0_9 = arith.constant 0 : index
    %c0_10 = arith.constant 0 : index
    %c0_11 = arith.constant 0 : index
    %22 = vector.load %arg2[%c0_9, %c0_10, %c0_11] : memref<30x16x128xbf16, #tpu.memory_space<vmem>>, vector<1x16x128xbf16>
    %23 = vector.shape_cast %22 : vector<1x16x128xbf16> to vector<16x128xbf16>
    %24 = arith.extf %23 : vector<16x128xbf16> to vector<16x128xf32>
    %c1_12 = arith.constant 1 : index
    %c0_13 = arith.constant 0 : index
    %c0_14 = arith.constant 0 : index
    %25 = vector.load %arg2[%c1_12, %c0_13, %c0_14] : memref<30x16x128xbf16, #tpu.memory_space<vmem>>, vector<1x16x128xbf16>
    %26 = vector.shape_cast %25 : vector<1x16x128xbf16> to vector<16x128xbf16>
    %27 = arith.extf %26 : vector<16x128xbf16> to vector<16x128xf32>
    %c2_15 = arith.constant 2 : index
    %c0_16 = arith.constant 0 : index
    %c0_17 = arith.constant 0 : index
    %28 = vector.load %arg2[%c2_15, %c0_16, %c0_17] : memref<30x16x128xbf16, #tpu.memory_space<vmem>>, vector<1x16x128xbf16>
    %29 = vector.shape_cast %28 : vector<1x16x128xbf16> to vector<16x128xbf16>
    %30 = arith.extf %29 : vector<16x128xbf16> to vector<16x128xf32>
    %c3_18 = arith.constant 3 : index
    %c0_19 = arith.constant 0 : index
    %c0_20 = arith.constant 0 : index
    %31 = vector.load %arg2[%c3_18, %c0_19, %c0_20] : memref<30x16x128xbf16, #tpu.memory_space<vmem>>, vector<1x16x128xbf16>
    %32 = vector.shape_cast %31 : vector<1x16x128xbf16> to vector<16x128xbf16>
    %33 = arith.extf %32 : vector<16x128xbf16> to vector<16x128xf32>
    %c4 = arith.constant 4 : index
    %c0_21 = arith.constant 0 : index
    %c0_22 = arith.constant 0 : index
    %34 = vector.load %arg2[%c4, %c0_21, %c0_22] : memref<30x16x128xbf16, #tpu.memory_space<vmem>>, vector<1x16x128xbf16>
    %35 = vector.shape_cast %34 : vector<1x16x128xbf16> to vector<16x128xbf16>
    %36 = arith.extf %35 : vector<16x128xbf16> to vector<16x128xf32>
    %cst_23 = arith.constant 0.000000e+00 : f32
    %37 = vector.broadcast %cst_23 : f32 to vector<16x128xf32>
    %38 = arith.maximumf %36, %37 : vector<16x128xf32>
    %39 = vector.broadcast %cst_23 : f32 to vector<16x128xf32>
    %40 = arith.subf %36, %39 : vector<16x128xf32>
    %41 = arith.cmpf one, %40, %40 : vector<16x128xf32>
    %42 = vector.broadcast %cst_23 : f32 to vector<16x128xf32>
    %43 = arith.addf %36, %42 : vector<16x128xf32>
    %44 = math.absf %40 : vector<16x128xf32>
    %cst_24 = arith.constant 0.000000e+00 : f32
    %45 = vector.broadcast %cst_24 : f32 to vector<16x128xf32>
    %46 = arith.subf %45, %44 : vector<16x128xf32>
    %47 = math.exp %46 : vector<16x128xf32>
    %48 = math.log1p %47 : vector<16x128xf32>
    %49 = arith.addf %38, %48 : vector<16x128xf32>
    %50 = arith.select %41, %43, %49 : vector<16x128xi1>, vector<16x128xf32>
    %cst_25 = arith.constant 1.000000e-03 : f32
    %51 = vector.broadcast %cst_25 : f32 to vector<16x128xf32>
    %52 = arith.addf %50, %51 : vector<16x128xf32>
    %c5 = arith.constant 5 : index
    %c0_26 = arith.constant 0 : index
    %c0_27 = arith.constant 0 : index
    %53 = vector.load %arg2[%c5, %c0_26, %c0_27] : memref<30x16x128xbf16, #tpu.memory_space<vmem>>, vector<1x16x128xbf16>
    %54 = vector.shape_cast %53 : vector<1x16x128xbf16> to vector<16x128xbf16>
    %55 = arith.extf %54 : vector<16x128xbf16> to vector<16x128xf32>
    %cst_28 = arith.constant 0.000000e+00 : f32
    %56 = vector.broadcast %cst_28 : f32 to vector<16x128xf32>
    %57 = arith.maximumf %55, %56 : vector<16x128xf32>
    %58 = vector.broadcast %cst_28 : f32 to vector<16x128xf32>
    %59 = arith.subf %55, %58 : vector<16x128xf32>
    %60 = arith.cmpf one, %59, %59 : vector<16x128xf32>
    %61 = vector.broadcast %cst_28 : f32 to vector<16x128xf32>
    %62 = arith.addf %55, %61 : vector<16x128xf32>
    %63 = math.absf %59 : vector<16x128xf32>
    %cst_29 = arith.constant 0.000000e+00 : f32
    %64 = vector.broadcast %cst_29 : f32 to vector<16x128xf32>
    %65 = arith.subf %64, %63 : vector<16x128xf32>
    %66 = math.exp %65 : vector<16x128xf32>
    %67 = math.log1p %66 : vector<16x128xf32>
    %68 = arith.addf %57, %67 : vector<16x128xf32>
    %69 = arith.select %60, %62, %68 : vector<16x128xi1>, vector<16x128xf32>
    %cst_30 = arith.constant 1.000000e-03 : f32
    %70 = vector.broadcast %cst_30 : f32 to vector<16x128xf32>
    %71 = arith.addf %69, %70 : vector<16x128xf32>
    %c6 = arith.constant 6 : index
    %c0_31 = arith.constant 0 : index
    %c0_32 = arith.constant 0 : index
    %72 = vector.load %arg2[%c6, %c0_31, %c0_32] : memref<30x16x128xbf16, #tpu.memory_space<vmem>>, vector<1x16x128xbf16>
    %73 = vector.shape_cast %72 : vector<1x16x128xbf16> to vector<16x128xbf16>
    %74 = arith.extf %73 : vector<16x128xbf16> to vector<16x128xf32>
    %cst_33 = arith.constant 0.000000e+00 : f32
    %75 = vector.broadcast %cst_33 : f32 to vector<16x128xf32>
    %76 = arith.maximumf %74, %75 : vector<16x128xf32>
    %77 = vector.broadcast %cst_33 : f32 to vector<16x128xf32>
    %78 = arith.subf %74, %77 : vector<16x128xf32>
    %79 = arith.cmpf one, %78, %78 : vector<16x128xf32>
    %80 = vector.broadcast %cst_33 : f32 to vector<16x128xf32>
    %81 = arith.addf %74, %80 : vector<16x128xf32>
    %82 = math.absf %78 : vector<16x128xf32>
    %cst_34 = arith.constant 0.000000e+00 : f32
    %83 = vector.broadcast %cst_34 : f32 to vector<16x128xf32>
    %84 = arith.subf %83, %82 : vector<16x128xf32>
    %85 = math.exp %84 : vector<16x128xf32>
    %86 = math.log1p %85 : vector<16x128xf32>
    %87 = arith.addf %76, %86 : vector<16x128xf32>
    %88 = arith.select %79, %81, %87 : vector<16x128xi1>, vector<16x128xf32>
    %cst_35 = arith.constant 1.000000e-03 : f32
    %89 = vector.broadcast %cst_35 : f32 to vector<16x128xf32>
    %90 = arith.addf %88, %89 : vector<16x128xf32>
    %c7 = arith.constant 7 : index
    %c0_36 = arith.constant 0 : index
    %c0_37 = arith.constant 0 : index
    %91 = vector.load %arg2[%c7, %c0_36, %c0_37] : memref<30x16x128xbf16, #tpu.memory_space<vmem>>, vector<1x16x128xbf16>
    %92 = vector.shape_cast %91 : vector<1x16x128xbf16> to vector<16x128xbf16>
    %93 = arith.extf %92 : vector<16x128xbf16> to vector<16x128xf32>
    %c8 = arith.constant 8 : index
    %c0_38 = arith.constant 0 : index
    %c0_39 = arith.constant 0 : index
    %94 = vector.load %arg2[%c8, %c0_38, %c0_39] : memref<30x16x128xbf16, #tpu.memory_space<vmem>>, vector<1x16x128xbf16>
    %95 = vector.shape_cast %94 : vector<1x16x128xbf16> to vector<16x128xbf16>
    %96 = arith.extf %95 : vector<16x128xbf16> to vector<16x128xf32>
    %c9 = arith.constant 9 : index
    %c0_40 = arith.constant 0 : index
    %c0_41 = arith.constant 0 : index
    %97 = vector.load %arg2[%c9, %c0_40, %c0_41] : memref<30x16x128xbf16, #tpu.memory_space<vmem>>, vector<1x16x128xbf16>
    %98 = vector.shape_cast %97 : vector<1x16x128xbf16> to vector<16x128xbf16>
    %99 = arith.extf %98 : vector<16x128xbf16> to vector<16x128xf32>
    %100 = arith.mulf %52, %71 : vector<16x128xf32>
    %101 = arith.mulf %100, %90 : vector<16x128xf32>
    %102 = tpu.reciprocal %101 {approx = true} : vector<16x128xf32> -> vector<16x128xf32>
    %103 = arith.mulf %101, %102 : vector<16x128xf32>
    %cst_42 = arith.constant 2.000000e+00 : f32
    %104 = vector.broadcast %cst_42 : f32 to vector<16x128xf32>
    %105 = arith.subf %104, %103 : vector<16x128xf32>
    %106 = arith.mulf %102, %105 : vector<16x128xf32>
    %107 = arith.mulf %71, %90 : vector<16x128xf32>
    %108 = arith.mulf %107, %106 : vector<16x128xf32>
    %109 = arith.mulf %52, %90 : vector<16x128xf32>
    %110 = arith.mulf %109, %106 : vector<16x128xf32>
    %111 = arith.mulf %52, %71 : vector<16x128xf32>
    %112 = arith.mulf %111, %106 : vector<16x128xf32>
    %113 = arith.subf %12, %27 : vector<16x128xf32>
    %114 = arith.mulf %113, %108 : vector<16x128xf32>
    %115 = arith.subf %14, %30 : vector<16x128xf32>
    %116 = arith.mulf %93, %114 : vector<16x128xf32>
    %117 = arith.subf %115, %116 : vector<16x128xf32>
    %118 = arith.mulf %117, %110 : vector<16x128xf32>
    %119 = arith.subf %16, %33 : vector<16x128xf32>
    %120 = arith.mulf %99, %114 : vector<16x128xf32>
    %121 = arith.subf %119, %120 : vector<16x128xf32>
    %122 = arith.mulf %96, %118 : vector<16x128xf32>
    %123 = arith.subf %121, %122 : vector<16x128xf32>
    %124 = arith.mulf %123, %112 : vector<16x128xf32>
    %125 = arith.mulf %114, %114 : vector<16x128xf32>
    %126 = arith.mulf %118, %118 : vector<16x128xf32>
    %127 = arith.addf %125, %126 : vector<16x128xf32>
    %128 = arith.mulf %124, %124 : vector<16x128xf32>
    %129 = arith.addf %127, %128 : vector<16x128xf32>
    %cst_43 = arith.constant -5.000000e-01 : f32
    %130 = vector.broadcast %cst_43 : f32 to vector<16x128xf32>
    %131 = arith.mulf %130, %129 : vector<16x128xf32>
    %132 = math.log %101 : vector<16x128xf32>
    %133 = arith.subf %131, %132 : vector<16x128xf32>
    %cst_44 = arith.constant 2.75681567 : f32
    %134 = vector.broadcast %cst_44 : f32 to vector<16x128xf32>
    %135 = arith.subf %133, %134 : vector<16x128xf32>
    %136 = arith.addf %24, %135 : vector<16x128xf32>
    %c10 = arith.constant 10 : index
    %c0_45 = arith.constant 0 : index
    %c0_46 = arith.constant 0 : index
    %137 = vector.load %arg2[%c10, %c0_45, %c0_46] : memref<30x16x128xbf16, #tpu.memory_space<vmem>>, vector<1x16x128xbf16>
    %138 = vector.shape_cast %137 : vector<1x16x128xbf16> to vector<16x128xbf16>
    %139 = arith.extf %138 : vector<16x128xbf16> to vector<16x128xf32>
    %c11 = arith.constant 11 : index
    %c0_47 = arith.constant 0 : index
    %c0_48 = arith.constant 0 : index
    %140 = vector.load %arg2[%c11, %c0_47, %c0_48] : memref<30x16x128xbf16, #tpu.memory_space<vmem>>, vector<1x16x128xbf16>
    %141 = vector.shape_cast %140 : vector<1x16x128xbf16> to vector<16x128xbf16>
    %142 = arith.extf %141 : vector<16x128xbf16> to vector<16x128xf32>
    %c12 = arith.constant 12 : index
    %c0_49 = arith.constant 0 : index
    %c0_50 = arith.constant 0 : index
    %143 = vector.load %arg2[%c12, %c0_49, %c0_50] : memref<30x16x128xbf16, #tpu.memory_space<vmem>>, vector<1x16x128xbf16>
    %144 = vector.shape_cast %143 : vector<1x16x128xbf16> to vector<16x128xbf16>
    %145 = arith.extf %144 : vector<16x128xbf16> to vector<16x128xf32>
    %c13 = arith.constant 13 : index
    %c0_51 = arith.constant 0 : index
    %c0_52 = arith.constant 0 : index
    %146 = vector.load %arg2[%c13, %c0_51, %c0_52] : memref<30x16x128xbf16, #tpu.memory_space<vmem>>, vector<1x16x128xbf16>
    %147 = vector.shape_cast %146 : vector<1x16x128xbf16> to vector<16x128xbf16>
    %148 = arith.extf %147 : vector<16x128xbf16> to vector<16x128xf32>
    %c14 = arith.constant 14 : index
    %c0_53 = arith.constant 0 : index
    %c0_54 = arith.constant 0 : index
    %149 = vector.load %arg2[%c14, %c0_53, %c0_54] : memref<30x16x128xbf16, #tpu.memory_space<vmem>>, vector<1x16x128xbf16>
    %150 = vector.shape_cast %149 : vector<1x16x128xbf16> to vector<16x128xbf16>
    %151 = arith.extf %150 : vector<16x128xbf16> to vector<16x128xf32>
    %cst_55 = arith.constant 0.000000e+00 : f32
    %152 = vector.broadcast %cst_55 : f32 to vector<16x128xf32>
    %153 = arith.maximumf %151, %152 : vector<16x128xf32>
    %154 = vector.broadcast %cst_55 : f32 to vector<16x128xf32>
    %155 = arith.subf %151, %154 : vector<16x128xf32>
    %156 = arith.cmpf one, %155, %155 : vector<16x128xf32>
    %157 = vector.broadcast %cst_55 : f32 to vector<16x128xf32>
    %158 = arith.addf %151, %157 : vector<16x128xf32>
    %159 = math.absf %155 : vector<16x128xf32>
    %cst_56 = arith.constant 0.000000e+00 : f32
    %160 = vector.broadcast %cst_56 : f32 to vector<16x128xf32>
    %161 = arith.subf %160, %159 : vector<16x128xf32>
    %162 = math.exp %161 : vector<16x128xf32>
    %163 = math.log1p %162 : vector<16x128xf32>
    %164 = arith.addf %153, %163 : vector<16x128xf32>
    %165 = arith.select %156, %158, %164 : vector<16x128xi1>, vector<16x128xf32>
    %cst_57 = arith.constant 1.000000e-03 : f32
    %166 = vector.broadcast %cst_57 : f32 to vector<16x128xf32>
    %167 = arith.addf %165, %166 : vector<16x128xf32>
    %c15 = arith.constant 15 : index
    %c0_58 = arith.constant 0 : index
    %c0_59 = arith.constant 0 : index
    %168 = vector.load %arg2[%c15, %c0_58, %c0_59] : memref<30x16x128xbf16, #tpu.memory_space<vmem>>, vector<1x16x128xbf16>
    %169 = vector.shape_cast %168 : vector<1x16x128xbf16> to vector<16x128xbf16>
    %170 = arith.extf %169 : vector<16x128xbf16> to vector<16x128xf32>
    %cst_60 = arith.constant 0.000000e+00 : f32
    %171 = vector.broadcast %cst_60 : f32 to vector<16x128xf32>
    %172 = arith.maximumf %170, %171 : vector<16x128xf32>
    %173 = vector.broadcast %cst_60 : f32 to vector<16x128xf32>
    %174 = arith.subf %170, %173 : vector<16x128xf32>
    %175 = arith.cmpf one, %174, %174 : vector<16x128xf32>
    %176 = vector.broadcast %cst_60 : f32 to vector<16x128xf32>
    %177 = arith.addf %170, %176 : vector<16x128xf32>
    %178 = math.absf %174 : vector<16x128xf32>
    %cst_61 = arith.constant 0.000000e+00 : f32
    %179 = vector.broadcast %cst_61 : f32 to vector<16x128xf32>
    %180 = arith.subf %179, %178 : vector<16x128xf32>
    %181 = math.exp %180 : vector<16x128xf32>
    %182 = math.log1p %181 : vector<16x128xf32>
    %183 = arith.addf %172, %182 : vector<16x128xf32>
    %184 = arith.select %175, %177, %183 : vector<16x128xi1>, vector<16x128xf32>
    %cst_62 = arith.constant 1.000000e-03 : f32
    %185 = vector.broadcast %cst_62 : f32 to vector<16x128xf32>
    %186 = arith.addf %184, %185 : vector<16x128xf32>
    %c16 = arith.constant 16 : index
    %c0_63 = arith.constant 0 : index
    %c0_64 = arith.constant 0 : index
    %187 = vector.load %arg2[%c16, %c0_63, %c0_64] : memref<30x16x128xbf16, #tpu.memory_space<vmem>>, vector<1x16x128xbf16>
    %188 = vector.shape_cast %187 : vector<1x16x128xbf16> to vector<16x128xbf16>
    %189 = arith.extf %188 : vector<16x128xbf16> to vector<16x128xf32>
    %cst_65 = arith.constant 0.000000e+00 : f32
    %190 = vector.broadcast %cst_65 : f32 to vector<16x128xf32>
    %191 = arith.maximumf %189, %190 : vector<16x128xf32>
    %192 = vector.broadcast %cst_65 : f32 to vector<16x128xf32>
    %193 = arith.subf %189, %192 : vector<16x128xf32>
    %194 = arith.cmpf one, %193, %193 : vector<16x128xf32>
    %195 = vector.broadcast %cst_65 : f32 to vector<16x128xf32>
    %196 = arith.addf %189, %195 : vector<16x128xf32>
    %197 = math.absf %193 : vector<16x128xf32>
    %cst_66 = arith.constant 0.000000e+00 : f32
    %198 = vector.broadcast %cst_66 : f32 to vector<16x128xf32>
    %199 = arith.subf %198, %197 : vector<16x128xf32>
    %200 = math.exp %199 : vector<16x128xf32>
    %201 = math.log1p %200 : vector<16x128xf32>
    %202 = arith.addf %191, %201 : vector<16x128xf32>
    %203 = arith.select %194, %196, %202 : vector<16x128xi1>, vector<16x128xf32>
    %cst_67 = arith.constant 1.000000e-03 : f32
    %204 = vector.broadcast %cst_67 : f32 to vector<16x128xf32>
    %205 = arith.addf %203, %204 : vector<16x128xf32>
    %c17 = arith.constant 17 : index
    %c0_68 = arith.constant 0 : index
    %c0_69 = arith.constant 0 : index
    %206 = vector.load %arg2[%c17, %c0_68, %c0_69] : memref<30x16x128xbf16, #tpu.memory_space<vmem>>, vector<1x16x128xbf16>
    %207 = vector.shape_cast %206 : vector<1x16x128xbf16> to vector<16x128xbf16>
    %208 = arith.extf %207 : vector<16x128xbf16> to vector<16x128xf32>
    %c18 = arith.constant 18 : index
    %c0_70 = arith.constant 0 : index
    %c0_71 = arith.constant 0 : index
    %209 = vector.load %arg2[%c18, %c0_70, %c0_71] : memref<30x16x128xbf16, #tpu.memory_space<vmem>>, vector<1x16x128xbf16>
    %210 = vector.shape_cast %209 : vector<1x16x128xbf16> to vector<16x128xbf16>
    %211 = arith.extf %210 : vector<16x128xbf16> to vector<16x128xf32>
    %c19 = arith.constant 19 : index
    %c0_72 = arith.constant 0 : index
    %c0_73 = arith.constant 0 : index
    %212 = vector.load %arg2[%c19, %c0_72, %c0_73] : memref<30x16x128xbf16, #tpu.memory_space<vmem>>, vector<1x16x128xbf16>
    %213 = vector.shape_cast %212 : vector<1x16x128xbf16> to vector<16x128xbf16>
    %214 = arith.extf %213 : vector<16x128xbf16> to vector<16x128xf32>
    %215 = arith.mulf %167, %186 : vector<16x128xf32>
    %216 = arith.mulf %215, %205 : vector<16x128xf32>
    %217 = tpu.reciprocal %216 {approx = true} : vector<16x128xf32> -> vector<16x128xf32>
    %218 = arith.mulf %216, %217 : vector<16x128xf32>
    %cst_74 = arith.constant 2.000000e+00 : f32
    %219 = vector.broadcast %cst_74 : f32 to vector<16x128xf32>
    %220 = arith.subf %219, %218 : vector<16x128xf32>
    %221 = arith.mulf %217, %220 : vector<16x128xf32>
    %222 = arith.mulf %186, %205 : vector<16x128xf32>
    %223 = arith.mulf %222, %221 : vector<16x128xf32>
    %224 = arith.mulf %167, %205 : vector<16x128xf32>
    %225 = arith.mulf %224, %221 : vector<16x128xf32>
    %226 = arith.mulf %167, %186 : vector<16x128xf32>
    %227 = arith.mulf %226, %221 : vector<16x128xf32>
    %228 = arith.subf %12, %142 : vector<16x128xf32>
    %229 = arith.mulf %228, %223 : vector<16x128xf32>
    %230 = arith.subf %14, %145 : vector<16x128xf32>
    %231 = arith.mulf %208, %229 : vector<16x128xf32>
    %232 = arith.subf %230, %231 : vector<16x128xf32>
    %233 = arith.mulf %232, %225 : vector<16x128xf32>
    %234 = arith.subf %16, %148 : vector<16x128xf32>
    %235 = arith.mulf %214, %229 : vector<16x128xf32>
    %236 = arith.subf %234, %235 : vector<16x128xf32>
    %237 = arith.mulf %211, %233 : vector<16x128xf32>
    %238 = arith.subf %236, %237 : vector<16x128xf32>
    %239 = arith.mulf %238, %227 : vector<16x128xf32>
    %240 = arith.mulf %229, %229 : vector<16x128xf32>
    %241 = arith.mulf %233, %233 : vector<16x128xf32>
    %242 = arith.addf %240, %241 : vector<16x128xf32>
    %243 = arith.mulf %239, %239 : vector<16x128xf32>
    %244 = arith.addf %242, %243 : vector<16x128xf32>
    %cst_75 = arith.constant -5.000000e-01 : f32
    %245 = vector.broadcast %cst_75 : f32 to vector<16x128xf32>
    %246 = arith.mulf %245, %244 : vector<16x128xf32>
    %247 = math.log %216 : vector<16x128xf32>
    %248 = arith.subf %246, %247 : vector<16x128xf32>
    %cst_76 = arith.constant 2.75681567 : f32
    %249 = vector.broadcast %cst_76 : f32 to vector<16x128xf32>
    %250 = arith.subf %248, %249 : vector<16x128xf32>
    %251 = arith.addf %139, %250 : vector<16x128xf32>
    %c20 = arith.constant 20 : index
    %c0_77 = arith.constant 0 : index
    %c0_78 = arith.constant 0 : index
    %252 = vector.load %arg2[%c20, %c0_77, %c0_78] : memref<30x16x128xbf16, #tpu.memory_space<vmem>>, vector<1x16x128xbf16>
    %253 = vector.shape_cast %252 : vector<1x16x128xbf16> to vector<16x128xbf16>
    %254 = arith.extf %253 : vector<16x128xbf16> to vector<16x128xf32>
    %c21 = arith.constant 21 : index
    %c0_79 = arith.constant 0 : index
    %c0_80 = arith.constant 0 : index
    %255 = vector.load %arg2[%c21, %c0_79, %c0_80] : memref<30x16x128xbf16, #tpu.memory_space<vmem>>, vector<1x16x128xbf16>
    %256 = vector.shape_cast %255 : vector<1x16x128xbf16> to vector<16x128xbf16>
    %257 = arith.extf %256 : vector<16x128xbf16> to vector<16x128xf32>
    %c22 = arith.constant 22 : index
    %c0_81 = arith.constant 0 : index
    %c0_82 = arith.constant 0 : index
    %258 = vector.load %arg2[%c22, %c0_81, %c0_82] : memref<30x16x128xbf16, #tpu.memory_space<vmem>>, vector<1x16x128xbf16>
    %259 = vector.shape_cast %258 : vector<1x16x128xbf16> to vector<16x128xbf16>
    %260 = arith.extf %259 : vector<16x128xbf16> to vector<16x128xf32>
    %c23 = arith.constant 23 : index
    %c0_83 = arith.constant 0 : index
    %c0_84 = arith.constant 0 : index
    %261 = vector.load %arg2[%c23, %c0_83, %c0_84] : memref<30x16x128xbf16, #tpu.memory_space<vmem>>, vector<1x16x128xbf16>
    %262 = vector.shape_cast %261 : vector<1x16x128xbf16> to vector<16x128xbf16>
    %263 = arith.extf %262 : vector<16x128xbf16> to vector<16x128xf32>
    %c24 = arith.constant 24 : index
    %c0_85 = arith.constant 0 : index
    %c0_86 = arith.constant 0 : index
    %264 = vector.load %arg2[%c24, %c0_85, %c0_86] : memref<30x16x128xbf16, #tpu.memory_space<vmem>>, vector<1x16x128xbf16>
    %265 = vector.shape_cast %264 : vector<1x16x128xbf16> to vector<16x128xbf16>
    %266 = arith.extf %265 : vector<16x128xbf16> to vector<16x128xf32>
    %cst_87 = arith.constant 0.000000e+00 : f32
    %267 = vector.broadcast %cst_87 : f32 to vector<16x128xf32>
    %268 = arith.maximumf %266, %267 : vector<16x128xf32>
    %269 = vector.broadcast %cst_87 : f32 to vector<16x128xf32>
    %270 = arith.subf %266, %269 : vector<16x128xf32>
    %271 = arith.cmpf one, %270, %270 : vector<16x128xf32>
    %272 = vector.broadcast %cst_87 : f32 to vector<16x128xf32>
    %273 = arith.addf %266, %272 : vector<16x128xf32>
    %274 = math.absf %270 : vector<16x128xf32>
    %cst_88 = arith.constant 0.000000e+00 : f32
    %275 = vector.broadcast %cst_88 : f32 to vector<16x128xf32>
    %276 = arith.subf %275, %274 : vector<16x128xf32>
    %277 = math.exp %276 : vector<16x128xf32>
    %278 = math.log1p %277 : vector<16x128xf32>
    %279 = arith.addf %268, %278 : vector<16x128xf32>
    %280 = arith.select %271, %273, %279 : vector<16x128xi1>, vector<16x128xf32>
    %cst_89 = arith.constant 1.000000e-03 : f32
    %281 = vector.broadcast %cst_89 : f32 to vector<16x128xf32>
    %282 = arith.addf %280, %281 : vector<16x128xf32>
    %c25 = arith.constant 25 : index
    %c0_90 = arith.constant 0 : index
    %c0_91 = arith.constant 0 : index
    %283 = vector.load %arg2[%c25, %c0_90, %c0_91] : memref<30x16x128xbf16, #tpu.memory_space<vmem>>, vector<1x16x128xbf16>
    %284 = vector.shape_cast %283 : vector<1x16x128xbf16> to vector<16x128xbf16>
    %285 = arith.extf %284 : vector<16x128xbf16> to vector<16x128xf32>
    %cst_92 = arith.constant 0.000000e+00 : f32
    %286 = vector.broadcast %cst_92 : f32 to vector<16x128xf32>
    %287 = arith.maximumf %285, %286 : vector<16x128xf32>
    %288 = vector.broadcast %cst_92 : f32 to vector<16x128xf32>
    %289 = arith.subf %285, %288 : vector<16x128xf32>
    %290 = arith.cmpf one, %289, %289 : vector<16x128xf32>
    %291 = vector.broadcast %cst_92 : f32 to vector<16x128xf32>
    %292 = arith.addf %285, %291 : vector<16x128xf32>
    %293 = math.absf %289 : vector<16x128xf32>
    %cst_93 = arith.constant 0.000000e+00 : f32
    %294 = vector.broadcast %cst_93 : f32 to vector<16x128xf32>
    %295 = arith.subf %294, %293 : vector<16x128xf32>
    %296 = math.exp %295 : vector<16x128xf32>
    %297 = math.log1p %296 : vector<16x128xf32>
    %298 = arith.addf %287, %297 : vector<16x128xf32>
    %299 = arith.select %290, %292, %298 : vector<16x128xi1>, vector<16x128xf32>
    %cst_94 = arith.constant 1.000000e-03 : f32
    %300 = vector.broadcast %cst_94 : f32 to vector<16x128xf32>
    %301 = arith.addf %299, %300 : vector<16x128xf32>
    %c26 = arith.constant 26 : index
    %c0_95 = arith.constant 0 : index
    %c0_96 = arith.constant 0 : index
    %302 = vector.load %arg2[%c26, %c0_95, %c0_96] : memref<30x16x128xbf16, #tpu.memory_space<vmem>>, vector<1x16x128xbf16>
    %303 = vector.shape_cast %302 : vector<1x16x128xbf16> to vector<16x128xbf16>
    %304 = arith.extf %303 : vector<16x128xbf16> to vector<16x128xf32>
    %cst_97 = arith.constant 0.000000e+00 : f32
    %305 = vector.broadcast %cst_97 : f32 to vector<16x128xf32>
    %306 = arith.maximumf %304, %305 : vector<16x128xf32>
    %307 = vector.broadcast %cst_97 : f32 to vector<16x128xf32>
    %308 = arith.subf %304, %307 : vector<16x128xf32>
    %309 = arith.cmpf one, %308, %308 : vector<16x128xf32>
    %310 = vector.broadcast %cst_97 : f32 to vector<16x128xf32>
    %311 = arith.addf %304, %310 : vector<16x128xf32>
    %312 = math.absf %308 : vector<16x128xf32>
    %cst_98 = arith.constant 0.000000e+00 : f32
    %313 = vector.broadcast %cst_98 : f32 to vector<16x128xf32>
    %314 = arith.subf %313, %312 : vector<16x128xf32>
    %315 = math.exp %314 : vector<16x128xf32>
    %316 = math.log1p %315 : vector<16x128xf32>
    %317 = arith.addf %306, %316 : vector<16x128xf32>
    %318 = arith.select %309, %311, %317 : vector<16x128xi1>, vector<16x128xf32>
    %cst_99 = arith.constant 1.000000e-03 : f32
    %319 = vector.broadcast %cst_99 : f32 to vector<16x128xf32>
    %320 = arith.addf %318, %319 : vector<16x128xf32>
    %c27 = arith.constant 27 : index
    %c0_100 = arith.constant 0 : index
    %c0_101 = arith.constant 0 : index
    %321 = vector.load %arg2[%c27, %c0_100, %c0_101] : memref<30x16x128xbf16, #tpu.memory_space<vmem>>, vector<1x16x128xbf16>
    %322 = vector.shape_cast %321 : vector<1x16x128xbf16> to vector<16x128xbf16>
    %323 = arith.extf %322 : vector<16x128xbf16> to vector<16x128xf32>
    %c28 = arith.constant 28 : index
    %c0_102 = arith.constant 0 : index
    %c0_103 = arith.constant 0 : index
    %324 = vector.load %arg2[%c28, %c0_102, %c0_103] : memref<30x16x128xbf16, #tpu.memory_space<vmem>>, vector<1x16x128xbf16>
    %325 = vector.shape_cast %324 : vector<1x16x128xbf16> to vector<16x128xbf16>
    %326 = arith.extf %325 : vector<16x128xbf16> to vector<16x128xf32>
    %c29 = arith.constant 29 : index
    %c0_104 = arith.constant 0 : index
    %c0_105 = arith.constant 0 : index
    %327 = vector.load %arg2[%c29, %c0_104, %c0_105] : memref<30x16x128xbf16, #tpu.memory_space<vmem>>, vector<1x16x128xbf16>
    %328 = vector.shape_cast %327 : vector<1x16x128xbf16> to vector<16x128xbf16>
    %329 = arith.extf %328 : vector<16x128xbf16> to vector<16x128xf32>
    %330 = arith.mulf %282, %301 : vector<16x128xf32>
    %331 = arith.mulf %330, %320 : vector<16x128xf32>
    %332 = tpu.reciprocal %331 {approx = true} : vector<16x128xf32> -> vector<16x128xf32>
    %333 = arith.mulf %331, %332 : vector<16x128xf32>
    %cst_106 = arith.constant 2.000000e+00 : f32
    %334 = vector.broadcast %cst_106 : f32 to vector<16x128xf32>
    %335 = arith.subf %334, %333 : vector<16x128xf32>
    %336 = arith.mulf %332, %335 : vector<16x128xf32>
    %337 = arith.mulf %301, %320 : vector<16x128xf32>
    %338 = arith.mulf %337, %336 : vector<16x128xf32>
    %339 = arith.mulf %282, %320 : vector<16x128xf32>
    %340 = arith.mulf %339, %336 : vector<16x128xf32>
    %341 = arith.mulf %282, %301 : vector<16x128xf32>
    %342 = arith.mulf %341, %336 : vector<16x128xf32>
    %343 = arith.subf %12, %257 : vector<16x128xf32>
    %344 = arith.mulf %343, %338 : vector<16x128xf32>
    %345 = arith.subf %14, %260 : vector<16x128xf32>
    %346 = arith.mulf %323, %344 : vector<16x128xf32>
    %347 = arith.subf %345, %346 : vector<16x128xf32>
    %348 = arith.mulf %347, %340 : vector<16x128xf32>
    %349 = arith.subf %16, %263 : vector<16x128xf32>
    %350 = arith.mulf %329, %344 : vector<16x128xf32>
    %351 = arith.subf %349, %350 : vector<16x128xf32>
    %352 = arith.mulf %326, %348 : vector<16x128xf32>
    %353 = arith.subf %351, %352 : vector<16x128xf32>
    %354 = arith.mulf %353, %342 : vector<16x128xf32>
    %355 = arith.mulf %344, %344 : vector<16x128xf32>
    %356 = arith.mulf %348, %348 : vector<16x128xf32>
    %357 = arith.addf %355, %356 : vector<16x128xf32>
    %358 = arith.mulf %354, %354 : vector<16x128xf32>
    %359 = arith.addf %357, %358 : vector<16x128xf32>
    %cst_107 = arith.constant -5.000000e-01 : f32
    %360 = vector.broadcast %cst_107 : f32 to vector<16x128xf32>
    %361 = arith.mulf %360, %359 : vector<16x128xf32>
    %362 = math.log %331 : vector<16x128xf32>
    %363 = arith.subf %361, %362 : vector<16x128xf32>
    %cst_108 = arith.constant 2.75681567 : f32
    %364 = vector.broadcast %cst_108 : f32 to vector<16x128xf32>
    %365 = arith.subf %363, %364 : vector<16x128xf32>
    %366 = arith.addf %254, %365 : vector<16x128xf32>
    %367 = arith.maximumf %24, %139 : vector<16x128xf32>
    %368 = arith.maximumf %367, %254 : vector<16x128xf32>
    %369 = arith.subf %24, %368 : vector<16x128xf32>
    %370 = math.exp %369 : vector<16x128xf32>
    %371 = arith.subf %139, %368 : vector<16x128xf32>
    %372 = math.exp %371 : vector<16x128xf32>
    %373 = arith.addf %370, %372 : vector<16x128xf32>
    %374 = arith.subf %254, %368 : vector<16x128xf32>
    %375 = math.exp %374 : vector<16x128xf32>
    %376 = arith.addf %373, %375 : vector<16x128xf32>
    %377 = math.log %376 : vector<16x128xf32>
    %378 = arith.addf %368, %377 : vector<16x128xf32>
    %379 = arith.maximumf %136, %251 : vector<16x128xf32>
    %380 = arith.maximumf %379, %366 : vector<16x128xf32>
    %381 = arith.subf %136, %380 : vector<16x128xf32>
    %382 = math.exp %381 : vector<16x128xf32>
    %383 = arith.subf %251, %380 : vector<16x128xf32>
    %384 = math.exp %383 : vector<16x128xf32>
    %385 = arith.addf %382, %384 : vector<16x128xf32>
    %386 = arith.subf %366, %380 : vector<16x128xf32>
    %387 = math.exp %386 : vector<16x128xf32>
    %388 = arith.addf %385, %387 : vector<16x128xf32>
    %389 = math.log %388 : vector<16x128xf32>
    %390 = arith.addf %380, %389 : vector<16x128xf32>
    %391 = arith.subf %390, %378 : vector<16x128xf32>
    %cst_109 = arith.constant 0.000000e+00 : f32
    %392 = vector.broadcast %cst_109 : f32 to vector<16x128xf32>
    %393 = arith.select %21, %391, %392 : vector<16x128xi1>, vector<16x128xf32>
    %394 = vector.extract_strided_slice %393 {offsets = [0, 0], sizes = [8, 128], strides = [1, 1]} : vector<16x128xf32> to vector<8x128xf32>
    %395 = vector.extract_strided_slice %393 {offsets = [8, 0], sizes = [8, 128], strides = [1, 1]} : vector<16x128xf32> to vector<8x128xf32>
    %396 = arith.addf %394, %395 : vector<8x128xf32>
    %c0_110 = arith.constant 0 : index
    %c0_111 = arith.constant 0 : index
    %397 = vector.load %arg4[%c0_110, %c0_111] : memref<8x128xf32, #tpu.memory_space<vmem>>, vector<8x128xf32>
    %398 = arith.addf %397, %396 : vector<8x128xf32>
    %c0_112 = arith.constant 0 : index
    %c0_113 = arith.constant 0 : index
    %399 = vector.load %arg4[%c0_112, %c0_113] : memref<8x128xf32, #tpu.memory_space<vmem>>, vector<8x128xf32>
    tpu.vector_store %arg4[%c0_112, %c0_113], %398 {strides = array<i32>} : memref<8x128xf32, #tpu.memory_space<vmem>>, vector<8x128xf32>,
    return
  }
  func.func @transform_0(%arg0: i32, %arg1: i32) -> (i32, i32, i32) {
    %c1_i32 = arith.constant 1 : i32
    %0 = arith.muli %arg0, %c1_i32 : i32
    %1 = arith.addi %0, %arg1 : i32
    %c0_i32 = arith.constant 0 : i32
    %2 = arith.minsi %1, %c0_i32 : i32
    %c0_i32_0 = arith.constant 0 : i32
    %c0_i32_1 = arith.constant 0 : i32
    %c0_i32_2 = arith.constant 0 : i32
    return %c0_i32_0, %2, %c0_i32_1 : i32, i32, i32
  }
  func.func @transform_1(%arg0: i32, %arg1: i32) -> (i32, i32, i32) {
    %c1_i32 = arith.constant 1 : i32
    %0 = arith.muli %arg0, %c1_i32 : i32
    %1 = arith.addi %0, %arg1 : i32
    %c0_i32 = arith.constant 0 : i32
    %2 = arith.minsi %1, %c0_i32 : i32
    %c0_i32_0 = arith.constant 0 : i32
    %c0_i32_1 = arith.constant 0 : i32
    %c0_i32_2 = arith.constant 0 : i32
    return %c0_i32_0, %2, %c0_i32_1 : i32, i32, i32
  }
  func.func @transform_2(%arg0: i32, %arg1: i32) -> (i32, i32) {
    %c0_i32 = arith.constant 0 : i32
    %c0_i32_0 = arith.constant 0 : i32
    return %arg0, %c0_i32 : i32, i32
  }
}

</mosaic_0001>

<bundles_post_ra>
// kernel: tpu_custom_call.1
= control target key start
LH: loop header
LB: loop body
LE: loop exit
PB: predicated region body
PF: predicated region fallthrough
CT: control target
= control target key end

     0   :  { %7 = vsyncpa [#allocation3], 0  ;;  %s1299_s0 = inlined_call_operand.hbm [shape: bf16[30,16,128], index: 0, kind: input, shape index: {}]   ;;  %s1300_s1 = inlined_call_operand.hbm [shape: f32[4,16,128], index: 1, kind: input, shape index: {}]   ;;  %s1301_s2 = inlined_call_operand.hbm [shape: f32[8,128], index: 2, kind: output, shape index: {}]  }
   0x1   :  { %8 = vsyncpa [#allocation6], 0 }
   0x2   :  { %9 = vsyncpa [#allocation4], 0  ;;  %s20_s11 = sshll.u32 %s1299_s0, 4  ;;  %s1039_s12 = smov [#allocation2]   ;;  %s21_s11 = int_to_ptr.hbm [resolvable:$true] %s20_s11 }
   0x3   :  { %s22_s13 = sshll.u32 %s1039_s12, 4  ;;  %s39_s16 = sshll.u32 %s1300_s1, 4  ;;  %s23_s13 = int_to_ptr.vmem [resolvable:$true] %s22_s13  ;;  %s40_s16 = int_to_ptr.hbm [resolvable:$true] %s39_s16 }
   0x4   :  { %s1040_s17 = smov 64   ;;  %s1041_s18 = smov 4  }
   0x5   :  { %28 = dma.hbm_to_vmem [thread:$0]  %s21_s11, 3840, %s23_s13, [#allocation3], %s1040_s17, %s1040_s17, %s1041_s18  }
   0x6   :  { %s1042_s19 = smov [#allocation5]   ;;  %s1043_s21 = smov 128  }
   0x7   :  { %s41_s20 = sshll.u32 %s1042_s19, 4  ;;  %s1044_s22 = smov 8   ;;  %s42_s20 = int_to_ptr.vmem [resolvable:$true] %s41_s20 }
   0x8   :  { %47 = dma.hbm_to_vmem [thread:$0]  %s40_s16, 1024, %s42_s20, [#allocation6], %s1043_s21, %s1043_s21, %s1044_s22  }
   0x9   :  { %1033 = dma.done.wait [#allocation3], 3840  }
   0xa   :  { %1034 = vsyncadd [#allocation3], 4294963456 }
   0xb   :  { %1035 = dma.done.wait [#allocation6], 1024  }
   0xc   :  { %1036 = vsyncadd [#allocation6], 4294966272  ;;  %v114_v0 = vld [vmem:[#allocation2 + $0x20] sm:$0xf]  ;;  %v157_v1 = vld [vmem:[#allocation2 + $0x28] sm:$0xf] }
   0xd   :  { %v1067_v2 = vunpack.c.l.bf16 %v114_v0  ;;  %v1069_v3 = vunpack.c.l.bf16 %v157_v1  ;;  %v200_v4 = vld [vmem:[#allocation2 + $0x30] sm:$0xf]  ;;  %v389_v8 = vld [vmem:[#allocation2 + $0x78] sm:$0xf]  ;;  %v432_v9 = vld [vmem:[#allocation2 + $0x80] sm:$0xf] }
   0xe   :  { %v1071_v5 = vunpack.c.l.bf16 %v200_v4  ;;  %v346_v6 = vld [vmem:[#allocation2 + $0x70] sm:$0xf]  ;;  %v1078_v15 = vunpack.c.l.bf16 %v389_v8  ;;  %v1080_v16 = vunpack.c.l.bf16 %v432_v9  ;;  %v578_v30 = vld [vmem:[#allocation2 + $0xc0] sm:$0xf]  ;;  %v621_v8 = vld [vmem:[#allocation2 + $0xc8] sm:$0xf] }
   0xf   :  { %v124_v7 = vand.u32 2147483647, %v1067_v2  ;;  %v167_v10 = vand.u32 2147483647, %v1069_v3  ;;  %v1076_v13 = vunpack.c.l.bf16 %v346_v6  ;;  %v118_v33 = vmax.f32 %v1067_v2, 0.0  ;;  %s1045_s0 = smov [#allocation7]  }
  0x10   :  { %v210_v12 = vand.u32 2147483647, %v1071_v5  ;;  %v399_v22 = vand.u32 2147483647, %v1078_v15  ;;  %v442_v24 = vand.u32 2147483647, %v1080_v16  ;;  %v1086_v40 = vunpack.c.l.bf16 %v578_v30 }
  0x11   :  { %v126_v11 = vsub.f32 0.0, %v124_v7  ;;  %v169_v14 = vsub.f32 0.0, %v167_v10  ;;  %v356_v20 = vand.u32 2147483647, %v1076_v13  ;;  %v161_v41 = vmax.f32 %v1069_v3, 0.0  ;;  %s866_s1 = sshll.u32 %s1045_s0, 4  ;;  %s867_s1 = int_to_ptr.vmem [resolvable:$true] %s866_s1 }
  0x12   :  { %v212_v18 = vsub.f32 0.0, %v210_v12  ;;  %v401_v25 = vsub.f32 0.0, %v399_v22  ;;  %v444_v27 = vsub.f32 0.0, %v442_v24  ;;  %vm120_vm0 = vcmp.ne.f32.partialorder %v1067_v2, %v1067_v2  ;;  %s868_s25 = sshll.u32 %s1301_s2, 4  ;;  %s869_s25 = int_to_ptr.hbm [resolvable:$true] %s868_s25 }
  0x13   :  { %v128_v17 = vmul.f32 1.442695, %v126_v11  ;;  %v171_v19 = vmul.f32 1.442695, %v169_v14  ;;  %v358_v23 = vsub.f32 0.0, %v356_v20  ;;  %v204_v45 = vmax.f32 %v1071_v5, 0.0 }
  0x14   :  { %v214_v21 = vmul.f32 1.442695, %v212_v18  ;;  %v403_v28 = vmul.f32 1.442695, %v401_v25  ;;  %v446_v29 = vmul.f32 1.442695, %v444_v27  ;;  %vm163_vm1 = vcmp.ne.f32.partialorder %v1069_v3, %v1069_v3 }
  0x15   :  { %897 = vpow2.f32 %v128_v17  ;;  %v360_v26 = vmul.f32 1.442695, %v358_v23  ;;  %v350_v49 = vmax.f32 %v1076_v13, 0.0  ;;  %v393_v50 = vmax.f32 %v1078_v15, 0.0 }
  0x16   :  { %899 = vpow2.f32 %v171_v19  ;;  %vm206_vm3 = vcmp.ne.f32.partialorder %v1071_v5, %v1071_v5  ;;  %v436_v54 = vmax.f32 %v1080_v16, 0.0  ;;  %v588_v55 = vand.u32 2147483647, %v1086_v40 }
  0x17   :  { %901 = vpow2.f32 %v214_v21  ;;  %vm352_vm5 = vcmp.ne.f32.partialorder %v1076_v13, %v1076_v13  ;;  %v1120_v23 = vunpack.c.l.bf16 %v621_v8  ;;  %vm395_vm10 = vcmp.ne.f32.partialorder %v1078_v15, %v1078_v15 }
  0x18   :  { %903 = vpow2.f32 %v360_v26  ;;  %vm438_vm11 = vcmp.ne.f32.partialorder %v1080_v16, %v1080_v16  ;;  %vm584_vm13 = vcmp.ne.f32.partialorder %v1086_v40, %v1086_v40 }
  0x19   :  { %905 = vpow2.f32 %v403_v28  ;;  %vm627_vm15 = vcmp.ne.f32.partialorder %v1120_v23, %v1120_v23 }
  0x1a   :  { %907 = vpow2.f32 %v446_v29 }
  0x1b   :  { %v898_v31 = vpop.eup %897 }
  0x1c   :  { %v900_v32 = vpop.eup %899  ;;  %v132_v34 = vadd.f32 1.0, %v898_v31  ;;  %v135_v35 = vmul.f32 -0.5, %v898_v31  ;;  %v138_v37 = vand.u32 2147483647, %v898_v31 }
  0x1d   :  { %v902_v36 = vpop.eup %901  ;;  %v175_v38 = vadd.f32 1.0, %v900_v32  ;;  %v178_v39 = vmul.f32 -0.5, %v900_v32  ;;  %v181_v42 = vand.u32 2147483647, %v900_v32 }
  0x1e   :  { %909 = vlog2.f32 %v132_v34  ;;  %v218_v43 = vadd.f32 1.0, %v902_v36  ;;  %v136_v44 = vadd.f32 1.0, %v135_v35  ;;  %v221_v46 = vmul.f32 -0.5, %v902_v36  ;;  %v904_v47 = vpop.eup %903 }
  0x1f   :  { %911 = vlog2.f32 %v175_v38  ;;  %v179_v48 = vadd.f32 1.0, %v178_v39  ;;  %v906_v51 = vpop.eup %905  ;;  %vm1096_vm2 = vcmp.lt.f32.partialorder %v138_v37, 0.0004427343  ;;  %vm1104_vm4 = vcmp.lt.f32.partialorder %v181_v42, 0.0004427343 }
  0x20   :  { %913 = vlog2.f32 %v218_v43  ;;  %v222_v53 = vadd.f32 1.0, %v221_v46  ;;  %v908_v56 = vpop.eup %907  ;;  %v224_v58 = vand.u32 2147483647, %v902_v36  ;;  %v364_v59 = vadd.f32 1.0, %v904_v47  ;;  %v664_v37 = vld [vmem:[#allocation2 + $0xd0] sm:$0xf] }
  0x21   :  { %v367_v60 = vmul.f32 -0.5, %v904_v47  ;;  %v137_v61 = vmul.f32 %v898_v31, %v136_v44  ;;  %v370_v62 = vand.u32 2147483647, %v904_v47  ;;  %v407_v63 = vadd.f32 1.0, %v906_v51 }
  0x22   :  { %v410_v0 = vmul.f32 -0.5, %v906_v51  ;;  %v180_v4 = vmul.f32 %v900_v32, %v179_v48  ;;  %v223_v6 = vmul.f32 %v902_v36, %v222_v53  ;;  %915 = vlog2.f32 %v364_v59 }
  0x23   :  { %v450_v7 = vadd.f32 1.0, %v908_v56  ;;  %v368_v11 = vadd.f32 1.0, %v367_v60  ;;  %917 = vlog2.f32 %v407_v63  ;;  %v413_v12 = vand.u32 2147483647, %v906_v51 }
  0x24   :  { %v910_v1 = vpop.eup %909  ;;  %vm1110_vm6 = vcmp.lt.f32.partialorder %v224_v58, 0.0004427343  ;;  %v411_v19 = vadd.f32 1.0, %v410_v0  ;;  %vm1116_vm7 = vcmp.lt.f32.partialorder %v370_v62, 0.0004427343  ;;  %v453_v26 = vmul.f32 -0.5, %v908_v56 }
  0x25   :  { %v912_v9 = vpop.eup %911  ;;  %v134_v10 = vmul.f32 0.6931472, %v910_v1  ;;  %919 = vlog2.f32 %v450_v7  ;;  %v456_v27 = vand.u32 2147483647, %v908_v56  ;;  %v369_v30 = vmul.f32 %v904_v47, %v368_v11 }
  0x26   :  { %v914_v14 = vpop.eup %913  ;;  %v177_v17 = vmul.f32 0.6931472, %v912_v9  ;;  %vm1126_vm8 = vcmp.lt.f32.partialorder %v413_v12, 0.0004427343  ;;  %v412_v35 = vmul.f32 %v906_v51, %v411_v19  ;;  %v454_v36 = vadd.f32 1.0, %v453_v26 }
  0x27   :  { %v140_v20 = vsel %vm1096_vm2, %v137_v61, %v134_v10  ;;  %v220_v21 = vmul.f32 0.6931472, %v914_v14  ;;  %vm1140_vm9 = vcmp.lt.f32.partialorder %v456_v27, 0.0004427343  ;;  %v1161_v57 = vunpack.c.l.bf16 %v664_v37  ;;  %v331_v19 = vld [vmem:[#allocation2 + $0x58] sm:$0xf] }
  0x28   :  { %v150_v24 = vadd.f32 %v140_v20, %v118_v33  ;;  %v183_v25 = vsel %vm1104_vm4, %v180_v4, %v177_v17  ;;  %v916_v32 = vpop.eup %915  ;;  %v455_v47 = vmul.f32 %v908_v56, %v454_v36  ;;  %v590_v59 = vsub.f32 0.0, %v588_v55  ;;  %v99_v17 = vld [vmem:[#allocation2 + $0x8] sm:$0xf] }
  0x29   :  { %v193_v28 = vadd.f32 %v183_v25, %v161_v41  ;;  %v226_v29 = vsel %vm1110_vm6, %v223_v6, %v220_v21  ;;  %v918_v38 = vpop.eup %917  ;;  %v366_v42 = vmul.f32 0.6931472, %v916_v32  ;;  %v631_v61 = vand.u32 2147483647, %v1120_v23 }
  0x2a   :  { %v152_v33 = vsel %vm120_vm0, %v1067_v2, %v150_v24  ;;  %v236_v34 = vadd.f32 %v226_v29, %v204_v45  ;;  %v409_v45 = vmul.f32 0.6931472, %v918_v38  ;;  %v674_v1 = vand.u32 2147483647, %v1161_v57 }
  0x2b   :  { %v1134_v39 = vadd.f32 0.001, %v152_v33  ;;  %v195_v41 = vsel %vm163_vm1, %v1069_v3, %v193_v28  ;;  %v920_v44 = vpop.eup %919  ;;  %v372_v51 = vsel %vm1116_vm7, %v369_v30, %v366_v42  ;;  %v592_v6 = vmul.f32 1.442695, %v590_v59  ;;  %v1203_v33 = vld [vmem:[#allocation5] sm:$0xff] }
  0x2c   :  { %v197_v46 = vadd.f32 0.001, %v195_v41  ;;  %v238_v2 = vsel %vm206_vm3, %v1071_v5, %v236_v34  ;;  %v452_v3 = vmul.f32 0.6931472, %v920_v44  ;;  %v382_v53 = vadd.f32 %v372_v51, %v350_v49  ;;  %v104_v41 = vld [vmem:[#allocation2 + $0x10] sm:$0xf] }
  0x2d   :  { %v1148_v48 = vadd.f32 0.001, %v238_v2  ;;  %v415_v5 = vsel %vm1126_vm8, %v412_v35, %v409_v45  ;;  %v676_v8 = vsub.f32 0.0, %v674_v1  ;;  %v101_v24 = vunpack.c.l.bf16 %v99_v17  ;;  %v336_v42 = vld [vmem:[#allocation2 + $0x60] sm:$0xf] }
  0x2e   :  { %v1155_v52 = vmul.f32 %v197_v46, %v1134_v39  ;;  %v425_v56 = vadd.f32 %v415_v5, %v393_v50  ;;  %v458_v58 = vsel %vm1140_vm9, %v455_v47, %v452_v3  ;;  %v384_v60 = vsel %vm352_vm5, %v1076_v13, %v382_v53  ;;  %v243_v3 = vld [vmem:[#allocation2 + $0x38] sm:$0xf] }
  0x2f   :  { %v468_v50 = vadd.f32 %v458_v58, %v436_v54  ;;  %v1182_v62 = vadd.f32 0.001, %v384_v60  ;;  %v633_v54 = vsub.f32 0.0, %v631_v61  ;;  %v269_v25 = vmul.f32 %v1148_v48, %v197_v46  ;;  %v475_v60 = vld [vmem:[#allocation2 + $0x88] sm:$0xf]  ;;  %v1217_v61 = vld [vmem:[#allocation5 + $0x10] sm:$0xff] }
  0x30   :  { %v1173_v49 = vmul.f32 %v1155_v52, %v1148_v48  ;;  %v427_v63 = vsel %vm395_vm10, %v1078_v15, %v425_v56  ;;  %v333_v26 = vunpack.c.l.bf16 %v331_v19  ;;  %v582_v43 = vmax.f32 %v1086_v40, 0.0  ;;  %v253_v19 = vld [vmem:[#allocation2 + $0x48] sm:$0xf] }
  0x31   :  { %v429_v55 = vadd.f32 0.001, %v427_v63  ;;  %v470_v0 = vsel %vm438_vm11, %v1080_v16, %v468_v50  ;;  %v635_v15 = vmul.f32 1.442695, %v633_v54  ;;  %v678_v16 = vmul.f32 1.442695, %v676_v8 }
  0x32   :  { %921 = vrcp.f32 %v1173_v49  ;;  %v1188_v4 = vadd.f32 0.001, %v470_v0  ;;  %v279_v45 = vsub.f32 %v1203_v33, %v101_v24  ;;  %v511_v47 = vsub.f32 %v1203_v33, %v333_v26  ;;  %v485_v26 = vld [vmem:[#allocation2 + $0x98] sm:$0xf] }
  0x33   :  { %v1191_v13 = vmul.f32 %v429_v55, %v1182_v62  ;;  %923 = vpow2.f32 %v592_v6  ;;  %v106_v58 = vunpack.c.l.bf16 %v104_v41  ;;  %v338_v59 = vunpack.c.l.bf16 %v336_v42 }
  0x34   :  { %v501_v34 = vmul.f32 %v1188_v4, %v429_v55  ;;  %v245_v0 = vunpack.c.l.bf16 %v243_v3  ;;  %vm670_vm1 = vcmp.ne.f32.partialorder %v1161_v57, %v1161_v57  ;;  %v480_v3 = vld [vmem:[#allocation2 + $0x90] sm:$0xf] }
  0x35   :  { %v1195_v7 = vmul.f32 %v1191_v13, %v1188_v4 }
  0x37   :  { %925 = vrcp.f32 %v1195_v7 }
  0x38   :  { %v922_v9 = vpop.eup %921  ;;  %927 = vpow2.f32 %v635_v15  ;;  %v477_v15 = vunpack.c.l.bf16 %v475_v60 }
  0x39   :  { %v263_v10 = vmul.f32 %v922_v9, %v1173_v49  ;;  %v924_v11 = vpop.eup %923  ;;  %929 = vpow2.f32 %v678_v16 }
  0x3a   :  { %v596_v12 = vadd.f32 1.0, %v924_v11  ;;  %v599_v14 = vmul.f32 -0.5, %v924_v11  ;;  %v602_v31 = vand.u32 2147483647, %v924_v11 }
  0x3b   :  { %v265_v18 = vsub.f32 2.0, %v263_v10  ;;  %v109_v10 = vld [vmem:[#allocation2 + $0x18] sm:$0xf] }
  0x3c   :  { %931 = vlog2.f32 %v596_v12  ;;  %v600_v27 = vadd.f32 1.0, %v599_v14  ;;  %vm1212_vm12 = vcmp.lt.f32.partialorder %v602_v31, 0.0004427343  ;;  %v515_v12 = vsub.f32 %v1217_v61, %v338_v59 }
  0x3d   :  { %v926_v20 = vpop.eup %925  ;;  %v1201_v29 = vmul.f32 %v922_v9, %v265_v18  ;;  %v625_v14 = vmax.f32 %v1120_v23, 0.0 }
  0x3e   :  { %v495_v21 = vmul.f32 %v926_v20, %v1195_v7  ;;  %v928_v22 = vpop.eup %927  ;;  %v601_v44 = vmul.f32 %v924_v11, %v600_v27  ;;  %v283_v11 = vsub.f32 %v1217_v61, %v106_v58 }
  0x3f   :  { %v930_v28 = vpop.eup %929  ;;  %v639_v32 = vadd.f32 1.0, %v928_v22  ;;  %v642_v35 = vmul.f32 -0.5, %v928_v22  ;;  %v271_v2 = vmul.f32 %v269_v25, %v1201_v29  ;;  %v645_v50 = vand.u32 2147483647, %v928_v22 }
  0x40   :  { %v497_v30 = vsub.f32 2.0, %v495_v21  ;;  %v682_v36 = vadd.f32 1.0, %v930_v28  ;;  %v685_v46 = vmul.f32 -0.5, %v930_v28  ;;  %v688_v6 = vand.u32 2147483647, %v930_v28 }
  0x41   :  { %933 = vlog2.f32 %v639_v32  ;;  %v643_v56 = vadd.f32 1.0, %v642_v35  ;;  %v1221_v1 = vmul.f32 %v279_v45, %v271_v2  ;;  %vm1230_vm14 = vcmp.lt.f32.partialorder %v645_v50, 0.0004427343  ;;  %v341_v21 = vld [vmem:[#allocation2 + $0x68] sm:$0xf] }
  0x42   :  { %v1206_v37 = vmul.f32 %v926_v20, %v497_v30  ;;  %v932_v38 = vpop.eup %931  ;;  %935 = vlog2.f32 %v682_v36  ;;  %v686_v55 = vadd.f32 1.0, %v685_v46  ;;  %v273_v20 = vmul.f32 %v1148_v48, %v1134_v39  ;;  %v1264_v46 = vld [vmem:[#allocation5 + $0x20] sm:$0xff] }
  0x43   :  { %v598_v5 = vmul.f32 0.6931472, %v932_v38  ;;  %v644_v16 = vmul.f32 %v928_v22, %v643_v56  ;;  %v285_v25 = vmul.f32 %v1221_v1, %v245_v0  ;;  %vm1243_vm0 = vcmp.lt.f32.partialorder %v688_v6, 0.0004427343 }
  0x44   :  { %v503_v53 = vmul.f32 %v501_v34, %v1206_v37  ;;  %v687_v24 = vmul.f32 %v930_v28, %v686_v55  ;;  %v505_v39 = vmul.f32 %v1188_v4, %v1182_v62  ;;  %v668_v32 = vmax.f32 %v1161_v57, 0.0 }
  0x45   :  { %v604_v63 = vsel %vm1212_vm12, %v601_v44, %v598_v5  ;;  %v111_v34 = vunpack.c.l.bf16 %v109_v10  ;;  %v255_v35 = vunpack.c.l.bf16 %v253_v19  ;;  %v343_v38 = vunpack.c.l.bf16 %v341_v21  ;;  %v568_v19 = vld [vmem:[#allocation2 + $0xb0] sm:$0xf] }
  0x46   :  { %v1225_v8 = vmul.f32 %v511_v47, %v503_v53  ;;  %v614_v9 = vadd.f32 %v604_v63, %v582_v43  ;;  %v248_v43 = vld [vmem:[#allocation2 + $0x40] sm:$0xf]  ;;  %v275_v62 = vmul.f32 %v273_v20, %v1201_v29  ;;  %v287_v4 = vsub.f32 %v283_v11, %v285_v25  ;;  %v563_v11 = vld [vmem:[#allocation2 + $0xa8] sm:$0xf] }
  0x47   :  { %v934_v54 = vpop.eup %933  ;;  %v507_v2 = vmul.f32 %v505_v39, %v1206_v37  ;;  %v250_v53 = vunpack.c.l.bf16 %v248_v43  ;;  %v293_v59 = vmul.f32 %v1221_v1, %v255_v35  ;;  %v482_v50 = vunpack.c.l.bf16 %v480_v3  ;;  %v94_v35 = vld [vmem:[#allocation2] sm:$0xf] }
  0x48   :  { %v936_v18 = vpop.eup %935  ;;  %v641_v22 = vmul.f32 0.6931472, %v934_v54  ;;  %v616_v27 = vsel %vm584_vm13, %v1086_v40, %v614_v9  ;;  %v517_v48 = vmul.f32 %v1225_v8, %v477_v15  ;;  %v487_v40 = vunpack.c.l.bf16 %v485_v26  ;;  %v558_v3 = vld [vmem:[#allocation2 + $0xa0] sm:$0xf] }
  0x49   :  { %v684_v30 = vmul.f32 0.6931472, %v936_v18  ;;  %v1253_v41 = vadd.f32 0.001, %v616_v27  ;;  %v289_v58 = vmul.f32 %v287_v4, %v275_v62  ;;  %v523_v55 = vsub.f32 %v1264_v46, %v343_v38  ;;  %v707_v27 = vld [vmem:[#allocation2 + $0xd8] sm:$0xf] }
  0x4a   :  { %v647_v28 = vsel %vm1230_vm14, %v644_v16, %v641_v22  ;;  %v519_v45 = vsub.f32 %v515_v12, %v517_v48  ;;  %v525_v0 = vmul.f32 %v1225_v8, %v487_v40  ;;  %v277_v16 = vmul.f32 %v1201_v29, %v1155_v52  ;;  %v573_v52 = vld [vmem:[#allocation2 + $0xb8] sm:$0xf] }
  0x4b   :  { %v657_v36 = vadd.f32 %v647_v28, %v625_v14  ;;  %v690_v42 = vsel %vm1243_vm0, %v687_v24, %v684_v30  ;;  %v509_v12 = vmul.f32 %v1206_v37, %v1191_v13  ;;  %v565_v18 = vunpack.c.l.bf16 %v563_v11  ;;  %v717_v30 = vld [vmem:[#allocation2 + $0xe8] sm:$0xf] }
  0x4c   :  { %v700_v51 = vadd.f32 %v690_v42, %v668_v32  ;;  %v521_v63 = vmul.f32 %v519_v45, %v507_v2  ;;  %v527_v15 = vsub.f32 %v523_v55, %v525_v0  ;;  %v303_v22 = vmul.f32 %v1221_v1, %v1221_v1  ;;  %v712_v45 = vld [vmem:[#allocation2 + $0xe0] sm:$0xf] }
  0x4d   :  { %v659_v44 = vsel %vm627_vm15, %v1120_v23, %v657_v36  ;;  %v291_v23 = vsub.f32 %v1264_v46, %v111_v34  ;;  %v305_v24 = vmul.f32 %v289_v58, %v289_v58  ;;  %v535_v25 = vmul.f32 %v1225_v8, %v1225_v8  ;;  %v326_v36 = vld [vmem:[#allocation2 + $0x50] sm:$0xf] }
  0x4e   :  { %v661_v47 = vadd.f32 0.001, %v659_v44  ;;  %v702_v5 = vsel %vm670_vm1, %v1161_v57, %v700_v51  ;;  %v297_v57 = vmul.f32 %v289_v58, %v250_v53  ;;  %v529_v9 = vmul.f32 %v521_v63, %v482_v50 }
  0x4f   :  { %v704_v60 = vadd.f32 0.001, %v702_v5  ;;  %v295_v54 = vsub.f32 %v291_v23, %v293_v59  ;;  %v537_v26 = vmul.f32 %v521_v63, %v521_v63  ;;  %v570_v31 = vunpack.c.l.bf16 %v568_v19 }
  0x50   :  { %v1269_v56 = vmul.f32 %v661_v47, %v1253_v41  ;;  %v531_v14 = vsub.f32 %v527_v15, %v529_v9  ;;  %v575_v39 = vunpack.c.l.bf16 %v573_v52  ;;  %v743_v1 = vsub.f32 %v1203_v33, %v565_v18 }
  0x51   :  { %v299_v10 = vsub.f32 %v295_v54, %v297_v57  ;;  %v733_v37 = vmul.f32 %v704_v60, %v661_v47  ;;  %v307_v28 = vadd.f32 %v305_v24, %v303_v22  ;;  %v709_v34 = vunpack.c.l.bf16 %v707_v27 }
  0x52   :  { %v1276_v6 = vmul.f32 %v1269_v56, %v704_v60  ;;  %v533_v29 = vmul.f32 %v531_v14, %v509_v12  ;;  %v719_v8 = vunpack.c.l.bf16 %v717_v30  ;;  %v539_v38 = vadd.f32 %v537_v26, %v535_v25 }
  0x53   :  { %v301_v21 = vmul.f32 %v299_v10, %v277_v16  ;;  %v737_v43 = vmul.f32 %v704_v60, %v1253_v41  ;;  %v328_v2 = vunpack.c.l.bf16 %v326_v36  ;;  %v755_v33 = vsub.f32 %v1264_v46, %v575_v39 }
  0x54   :  { %937 = vrcp.f32 %v1276_v6  ;;  %v541_v40 = vmul.f32 %v533_v29, %v533_v29  ;;  %v714_v59 = vunpack.c.l.bf16 %v712_v45  ;;  %v560_v63 = vunpack.c.l.bf16 %v558_v3  ;;  %v88_v3 = vld [vmem:[#allocation5 + $0x30] sm:$0xff] }
  0x55   :  { %939 = vlog2.f32 %v1173_v49  ;;  %v309_v32 = vmul.f32 %v301_v21, %v301_v21  ;;  %v747_v49 = vsub.f32 %v1217_v61, %v570_v31  ;;  %v71_v45 = vlaneseq }
  0x56   :  { %941 = vlog2.f32 %v1195_v7  ;;  %v96_v7 = vunpack.c.l.bf16 %v94_v35  ;;  %v543_v51 = vadd.f32 %v541_v40, %v539_v38  ;;  %vm90_vm3 = vcmp.gt.f32.partialorder %v88_v3, 0.0 }
  0x57   :  { %v311_v44 = vadd.f32 %v309_v32, %v307_v28  ;;  %943 = vlog2.f32 %v1276_v6 }
  0x58   :  { %v789_v23 = vmax.f32 %v96_v7, %v328_v2  ;;  %v545_v55 = vmul.f32 -0.5, %v543_v51 }
  0x59   :  { %v313_v61 = vmul.f32 -0.5, %v311_v44 }
  0x5a   :  { %v938_v17 = vpop.eup %937  ;;  %v791_v57 = vmax.f32 %v789_v23, %v560_v63 }
  0x5b   :  { %v727_v20 = vmul.f32 %v938_v17, %v1276_v6  ;;  %v940_v4 = vpop.eup %939 }
  0x5c   :  { %v942_v47 = vpop.eup %941  ;;  %v316_v41 = vmul.f32 0.6931472, %v940_v4  ;;  %v793_v18 = vsub.f32 %v96_v7, %v791_v57  ;;  %v807_v26 = vsub.f32 %v560_v63, %v791_v57 }
  0x5d   :  { %v729_v13 = vsub.f32 2.0, %v727_v20  ;;  %v548_v60 = vmul.f32 0.6931472, %v942_v47  ;;  %v944_v19 = vpop.eup %943  ;;  %v799_v20 = vsub.f32 %v328_v2, %v791_v57  ;;  %v72_v47 = vshrl.u32 %v71_v45, 7 }
  0x5e   :  { %v319_v10 = vsub.f32 %v313_v61, %v316_v41  ;;  %v780_v52 = vmul.f32 0.6931472, %v944_v19  ;;  %v795_v6 = vmul.f32 1.442695, %v793_v18 }
  0x5f   :  { %v731_v48 = vmul.f32 %v938_v17, %v729_v13  ;;  %v551_v11 = vsub.f32 %v545_v55, %v548_v60  ;;  %v801_v29 = vmul.f32 1.442695, %v799_v20  ;;  %vm77_vm2 = vcmp.lt.s32.totalorder %v72_v47, 2 }
  0x60   :  { %v883_v21 = vadd.f32 -2.7568157, %v319_v10  ;;  %945 = vpow2.f32 %v795_v6  ;;  %vm92_vm4 = vmand %vm90_vm3, %vm77_vm2 }
  0x61   :  { %v735_v42 = vmul.f32 %v733_v37, %v731_v48  ;;  %v739_v53 = vmul.f32 %v737_v43, %v731_v48  ;;  %v741_v46 = vmul.f32 %v731_v48, %v1269_v56  ;;  %v885_v22 = vadd.f32 -2.7568157, %v551_v11 }
  0x62   :  { %v323_v56 = vadd.f32 %v883_v21, %v96_v7  ;;  %947 = vpow2.f32 %v801_v29  ;;  %v809_v37 = vmul.f32 1.442695, %v807_v26 }
  0x63   :  { %v745_v62 = vmul.f32 %v743_v1, %v735_v42  ;;  %v555_v27 = vadd.f32 %v885_v22, %v328_v2 }
  0x64   :  { %949 = vpow2.f32 %v809_v37 }
  0x65   :  { %v749_v5 = vmul.f32 %v745_v62, %v709_v34  ;;  %v757_v58 = vmul.f32 %v745_v62, %v719_v8  ;;  %v767_v9 = vmul.f32 %v745_v62, %v745_v62  ;;  %v821_v39 = vmax.f32 %v323_v56, %v555_v27 }
  0x66   :  { %v946_v1 = vpop.eup %945 }
  0x67   :  { %v751_v50 = vsub.f32 %v747_v49, %v749_v5  ;;  %v759_v54 = vsub.f32 %v755_v33, %v757_v58 }
  0x68   :  { %v948_v32 = vpop.eup %947 }
  0x69   :  { %v753_v0 = vmul.f32 %v751_v50, %v739_v53  ;;  %v805_v36 = vadd.f32 %v948_v32, %v946_v1 }
  0x6a   :  { %v950_v43 = vpop.eup %949 }
  0x6b   :  { %v761_v15 = vmul.f32 %v753_v0, %v714_v59  ;;  %v769_v16 = vmul.f32 %v753_v0, %v753_v0  ;;  %v813_v62 = vadd.f32 %v950_v43, %v805_v36 }
  0x6d   :  { %v763_v12 = vsub.f32 %v759_v54, %v761_v15  ;;  %v771_v17 = vadd.f32 %v769_v16, %v767_v9 }
  0x6f   :  { %v765_v14 = vmul.f32 %v763_v12, %v741_v46 }
  0x71   :  { %v773_v24 = vmul.f32 %v765_v14, %v765_v14 }
  0x73   :  { %v775_v25 = vadd.f32 %v773_v24, %v771_v17 }
  0x75   :  { %v777_v30 = vmul.f32 -0.5, %v775_v25 }
  0x77   :  { %v783_v13 = vsub.f32 %v777_v30, %v780_v52 }
  0x79   :  { %v887_v31 = vadd.f32 -2.7568157, %v783_v13 }
  0x7b   :  { %v787_v48 = vadd.f32 %v887_v31, %v560_v63 }
  0x7d   :  { %v823_v28 = vmax.f32 %v821_v39, %v787_v48 }
  0x7f   :  { %v825_v34 = vsub.f32 %v323_v56, %v823_v28  ;;  %v831_v8 = vsub.f32 %v555_v27, %v823_v28  ;;  %v839_v35 = vsub.f32 %v787_v48, %v823_v28 }
  0x81   :  { %v827_v38 = vmul.f32 1.442695, %v825_v34  ;;  %v833_v40 = vmul.f32 1.442695, %v831_v8  ;;  %v841_v42 = vmul.f32 1.442695, %v839_v35 }
  0x83   :  { %951 = vpow2.f32 %v827_v38 }
  0x84   :  { %953 = vpow2.f32 %v833_v40 }
  0x85   :  { %955 = vpow2.f32 %v841_v42 }
  0x86   :  { %957 = vlog2.f32 %v813_v62 }
  0x89   :  { %v952_v49 = vpop.eup %951 }
  0x8a   :  { %v954_v4 = vpop.eup %953 }
  0x8b   :  { %v956_v7 = vpop.eup %955  ;;  %v837_v44 = vadd.f32 %v954_v4, %v952_v49 }
  0x8c   :  { %v958_v33 = vpop.eup %957 }
  0x8d   :  { %v845_v2 = vadd.f32 %v956_v7, %v837_v44  ;;  %v816_v51 = vmul.f32 0.6931472, %v958_v33 }
  0x8f   :  { %959 = vlog2.f32 %v845_v2  ;;  %v819_v5 = vadd.f32 %v816_v51, %v791_v57 }
  0x95   :  { %v960_v53 = vpop.eup %959 }
  0x96   :  { %v848_v58 = vmul.f32 0.6931472, %v960_v53 }
  0x98   :  { %v851_v23 = vadd.f32 %v848_v58, %v823_v28 }
  0x9a   :  { %v853_v59 = vsub.f32 %v851_v23, %v819_v5 }
  0x9c   :  { %v855_v50 = vsel %vm92_vm4, %v853_v59, 0.0 }
  0x9d   :  { %860 = vst [vmem:[#allocation7] sm:$0xff] %v855_v50 }
  0x9e   :  { %871 = dma.vmem_to_hbm [thread:$0]  %s867_s1, 128, %s869_s25, [#allocation4]  }
  0x9f   :  { %1037 = dma.done.wait [#allocation4], 128  }
  0xa0   :  { %1038 = vsyncadd [#allocation4], 4294967168 }
  0xa1   :  { %876 = vsyncpa [#allocation3], 1 }
  0xa2   :  { %877 = vsyncpa [#allocation6], 1 }
  0xa3   :  { %878 = vsyncpa [#allocation4], 1 }

</bundles_post_ra>
